<compile_context>
chip_gen: v7x
topology: tpu7x:2x2x1
jax: 0.10.0
libtpu: 0.0.40
codegen_flags: <defaults>
</compile_context>

<pallas_src>
import functools

import jax
import jax.numpy as jnp
from jax.experimental import pallas as pl
from jax.experimental.pallas import tpu as pltpu


def _round_up(n, m):
    return ((n + m - 1) // m) * m


def _pad2(a, rows, cols):
    return jnp.pad(a, ((0, rows - a.shape[0]), (0, cols - a.shape[1])))


# ----------------------------------------------------------------------------
# Pallas kernel: encode -> reparameterize -> decode for one batch tile.
# ----------------------------------------------------------------------------
def _vae_kernel(
    x_ref,                 # (TB, FP)   input tile, f32
    wh1_ref, bh1_ref,      # (FP, FP) mxu dtype, (1, FP) f32     encoder h1
    wenc_ref, benc_ref,    # (FP, 2FP) mxu dtype, (1, 2FP) f32   fused [mu1 | var2]
    wh2_ref, bh2_ref,      # (FP, FP) mxu dtype, (1, FP) f32     decoder h2
    wdec_ref, bdec_ref,    # (FP, 2FP) mxu dtype, (1, 2FP) f32   fused [mu2 | var2]
    epsz_ref,              # (TB, FP)   eps for sample_z, f32
    epsx_ref,              # (TB, FP)   eps for sample_x, f32
    xrec_ref,              # (TB, FP)   out: x reconstruction
    zmu_ref,               # (TB, FP)   out: z_mu
    zlv_ref,               # (TB, FP)   out: z_logvar
):
    fp = x_ref.shape[1]
    mdt = wh1_ref.dtype    # MXU operand dtype (bf16 fast path; f32 if requested)
    x = x_ref[...]

    # ---- encode ----
    h = jnp.dot(x.astype(mdt), wh1_ref[...],
                preferred_element_type=jnp.float32) + bh1_ref[...]
    h = jnp.maximum(h, 0.0)                                      # ReLU (f32)

    # One fused matmul for z_mu and z_logvar (shared LHS h).
    enc = jnp.dot(h.astype(mdt), wenc_ref[...],
                  preferred_element_type=jnp.float32) + benc_ref[...]
    z_mu = enc[:, :fp]                 # slice boundaries are 128-lane aligned
    z_logvar = enc[:, fp:]

    # sample_z: mu + exp(logvar / 2) * eps
    z = z_mu + jnp.exp(z_logvar * 0.5) * epsz_ref[...]

    # ---- decode ----
    h2 = jnp.dot(z.astype(mdt), wh2_ref[...],
                 preferred_element_type=jnp.float32) + bh2_ref[...]

    # One fused matmul for x_mu and x_logvar (shared LHS h2).
    dec = jnp.dot(h2.astype(mdt), wdec_ref[...],
                  preferred_element_type=jnp.float32) + bdec_ref[...]
    x_mu = dec[:, :fp]
    x_logvar = dec[:, fp:]

    # sample_x then sigmoid(x) = 0.5 * (tanh(x/2) + 1)  (single EUP op).
    x_s = x_mu + jnp.exp(x_logvar * 0.5) * epsx_ref[...]
    xrec_ref[...] = 0.5 * (jnp.tanh(x_s * 0.5) + 1.0)
    zmu_ref[...] = z_mu
    zlv_ref[...] = z_logvar


# ----------------------------------------------------------------------------
# One-time weight prep (module-__init__ style): pad, fuse, cast.
# ----------------------------------------------------------------------------
def prepare_vae_params(params, mxu_dtype=jnp.bfloat16):
    """Zero-pads every feature dim to a 128-lane multiple, fuses the shared-LHS
    [mu1|var2] and [mu2|var2] weights, and stores matmul operands in the MXU
    dtype (biases stay f32).  Done ONCE outside the jitted forward so the
    per-call path never re-materializes padded/fused weights through XLA
    pad/concat ops."""
    f32 = jnp.float32
    D = params["wh1"].shape[0]
    H = params["wh1"].shape[1]
    Z = params["wmu1"].shape[1]
    # The module's forward (var2 reuse + sample_* broadcasting) only works when
    # all three dims coincide.
    assert D == H == Z, "GaussianMLP_VAE forward requires input_dim == hidden_dim == z_dim"
    FP = _round_up(D, 128)

    def wpad(a):
        return _pad2(a.astype(f32), FP, FP).astype(mxu_dtype)

    def bpad(a):
        return _pad2(a.astype(f32), 1, FP)

    return {
        "wh1": wpad(params["wh1"]),
        "bh1": bpad(params["bh1"]),
        "wenc": jnp.concatenate([wpad(params["wmu1"]), wpad(params["wvar2"])], axis=1),
        "benc": jnp.concatenate([bpad(params["bmu1"]), bpad(params["bvar2"])], axis=1),
        "wh2": wpad(params["wh2"]),
        "bh2": bpad(params["bh2"]),
        "wdec": jnp.concatenate([wpad(params["wmu2"]), wpad(params["wvar2"])], axis=1),
        "bdec": jnp.concatenate([bpad(params["bmu2"]), bpad(params["bvar2"])], axis=1),
    }


# ----------------------------------------------------------------------------
# Jitted forward: only pads the per-call data (x, eps) and runs one pallas_call.
# ----------------------------------------------------------------------------
@functools.partial(jax.jit, static_argnames=("tile_b",))
def gaussian_mlp_vae_forward(x, prepped, eps_z, eps_x, *, tile_b=512):
    """Runs the VAE forward pass in one Pallas call.

    x:       (B, D) float32
    prepped: output of prepare_vae_params (padded/fused weights, computed once)
    eps_z:   (B, Z) float32   (torch.randn equivalent for sample_z)
    eps_x:   (B, D) float32   (torch.randn equivalent for sample_x)
    returns (x_recon, z_mu, z_logvar)
    """
    B, F = x.shape
    FP = prepped["wh1"].shape[0]
    assert FP == _round_up(F, 128)
    f32 = jnp.float32

    # Batch tiling: sublane-aligned, large tiles (~85% of HBM roofline at 512
    # on v6e vs ~29% at 128), and at least 2 grid tiles when the batch allows
    # so the "parallel" axis can shard across v7x's two TensorCores.
    BP8 = _round_up(B, 8)
    n_tiles = max(1, pl.cdiv(BP8, tile_b))
    if BP8 >= 16:
        n_tiles = max(n_tiles, 2)
    TB = _round_up(pl.cdiv(BP8, n_tiles), 8)
    BP = TB * n_tiles

    # NOTE: eps_z / eps_x could be generated in-kernel (pltpu.prng_seed +
    # pltpu.stateful_normal) to cut streamed bytes by ~2/3, but that changes
    # the RNG stream vs. torch.randn, so they stay external inputs here.
    x_p = _pad2(x.astype(f32), BP, FP)
    eps_z_p = _pad2(eps_z.astype(f32), BP, FP)
    eps_x_p = _pad2(eps_x.astype(f32), BP, FP)

    def batch_spec(lanes):
        return pl.BlockSpec((TB, lanes), lambda i: (i, 0))

    def resident(shape):
        # Constant block index -> weights/biases stay VMEM-resident across
        # grid steps (no re-DMA).
        return pl.BlockSpec(shape, lambda i: (0, 0))

    w_itemsize = jnp.dtype(prepped["wh1"].dtype).itemsize
    weight_bytes = 6 * FP * FP * w_itemsize + 6 * FP * 4          # weights + biases
    stream_bytes = 3 * TB * FP * 4                                 # x, eps_z, eps_x per step
    out_bytes = 3 * TB * FP * 4
    # Double-buffered streams/outputs + double-buffered residents + headroom,
    # clamped to a limit that is safe on every generation (<= v7x physical).
    vmem_est = 2 * (weight_bytes + stream_bytes + out_bytes)
    vmem_limit = int(min(max(2 * vmem_est, 16 * 1024 * 1024), 64 * 1024 * 1024))

    cost = pl.CostEstimate(
        flops=12 * BP * FP * FP + 16 * BP * FP,
        transcendentals=3 * BP * FP,
        bytes_accessed=int(weight_bytes + 6 * BP * FP * 4),
    )

    out_struct = jax.ShapeDtypeStruct((BP, FP), f32)
    x_rec, z_mu, z_logvar = pl.pallas_call(
        _vae_kernel,
        out_shape=(out_struct, out_struct, out_struct),
        grid=(n_tiles,),
        in_specs=[
            batch_spec(FP),                                  # x
            resident((FP, FP)), resident((1, FP)),           # wh1, bh1
            resident((FP, 2 * FP)), resident((1, 2 * FP)),   # wenc, benc
            resident((FP, FP)), resident((1, FP)),           # wh2, bh2
            resident((FP, 2 * FP)), resident((1, 2 * FP)),   # wdec, bdec
            batch_spec(FP),                                  # eps_z
            batch_spec(FP),                                  # eps_x
        ],
        out_specs=(batch_spec(FP), batch_spec(FP), batch_spec(FP)),
        compiler_params=pltpu.CompilerParams(
            dimension_semantics=("parallel",),
            vmem_limit_bytes=vmem_limit,
        ),
        cost_estimate=cost,
    )(x_p, prepped["wh1"], prepped["bh1"], prepped["wenc"], prepped["benc"],
      prepped["wh2"], prepped["bh2"], prepped["wdec"], prepped["bdec"],
      eps_z_p, eps_x_p)

    # Unpad: pure slices — each output is already a lane-dense FP-wide block.
    return x_rec[:B, :F], z_mu[:B, :F], z_logvar[:B, :F]


# ----------------------------------------------------------------------------
# Deterministic parameter construction (mimics nn.Linear default init:
# U(-1/sqrt(fan_in), 1/sqrt(fan_in)) for both weight and bias).
# ----------------------------------------------------------------------------
def _linear_params(key, fan_in, fan_out):
    kw, kb = jax.random.split(key)
    bound = 1.0 / jnp.sqrt(jnp.float32(fan_in))
    # Stored directly as [in, out] (i.e. PyTorch weight transposed).
    w = jax.random.uniform(kw, (fan_in, fan_out), jnp.float32, -bound, bound)
    b = jax.random.uniform(kb, (1, fan_out), jnp.float32, -bound, bound)
    return w, b


def init_params(key, input_dim, hidden_dim, z_dim):
    keys = jax.random.split(key, 6)
    params = {}
    # Encoder: buildEncoder(n_dims, hidden_dim, z_dim)
    params["wh1"], params["bh1"] = _linear_params(keys[0], input_dim, hidden_dim)
    params["wmu1"], params["bmu1"] = _linear_params(keys[1], hidden_dim, z_dim)
    params["wvar1"], params["bvar1"] = _linear_params(keys[2], hidden_dim, z_dim)  # unused in forward
    # Decoder: buildDecoder(hidden_dim, n_dims, z_dim)
    params["wh2"], params["bh2"] = _linear_params(keys[3], z_dim, input_dim)
    params["wmu2"], params["bmu2"] = _linear_params(keys[4], input_dim, hidden_dim)
    params["wvar2"], params["bvar2"] = _linear_params(keys[5], input_dim, hidden_dim)
    return params


# ----------------------------------------------------------------------------
# Pure-JAX f32 reference (same math, no Pallas, no padding/fusion).
# ----------------------------------------------------------------------------
def _reference_forward(x, p, eps_z, eps_x):
    h = jnp.maximum(x @ p["wh1"] + p["bh1"], 0.0)
    z_mu = h @ p["wmu1"] + p["bmu1"]
    z_logvar = h @ p["wvar2"] + p["bvar2"]
    z = z_mu + jnp.exp(z_logvar * 0.5) * eps_z
    h2 = z @ p["wh2"] + p["bh2"]
    x_mu = h2 @ p["wmu2"] + p["bmu2"]
    x_logvar = h2 @ p["wvar2"] + p["bvar2"]
    x_rec = jax.nn.sigmoid(x_mu + jnp.exp(x_logvar * 0.5) * eps_x)
    return x_rec, z_mu, z_logvar


if __name__ == "__main__":
    # Config: the module's forward only type-checks when these are all equal
    # (encode/decode reuse var2 and rely on broadcasting in sample_*).
    INPUT_DIM = 32
    HIDDEN_DIM = 32
    Z_DIM = 32
    BATCH = 8

    key = jax.random.PRNGKey(0)
    k_params, k_x, k_ez, k_ex = jax.random.split(key, 4)

    params = init_params(k_params, INPUT_DIM, HIDDEN_DIM, Z_DIM)
    # One-time weight prep (padding + fusion + bf16 cast), like module __init__.
    prepped = prepare_vae_params(params, mxu_dtype=jnp.bfloat16)

    x = jax.random.normal(k_x, (BATCH, INPUT_DIM), jnp.float32)
    # torch.randn equivalents for the reparameterization trick (glue, not kernel)
    eps_z = jax.random.normal(k_ez, (BATCH, Z_DIM), jnp.float32)
    eps_x = jax.random.normal(k_ex, (BATCH, INPUT_DIM), jnp.float32)

    x_rec, z_mu, z_logvar = gaussian_mlp_vae_forward(x, prepped, eps_z, eps_x)
    jax.block_until_ready((x_rec, z_mu, z_logvar))

    # Sanity check against the plain-JAX f32 reference.  MXU operands are bf16
    # (f32 accumulate / elementwise), so parity is ~1e-2 rather than 1e-5.
    r_x, r_mu, r_lv = _reference_forward(x, params, eps_z, eps_x)
    assert x_rec.shape == (BATCH, HIDDEN_DIM)
    assert z_mu.shape == (BATCH, Z_DIM)
    assert z_logvar.shape == (BATCH, HIDDEN_DIM)
    TOL = dict(atol=5e-2, rtol=5e-2)
    assert jnp.allclose(x_rec, r_x, **TOL)
    assert jnp.allclose(z_mu, r_mu, **TOL)
    assert jnp.allclose(z_logvar, r_lv, **TOL)

    # Second check: a batch that is not a multiple of the sublane size
    # exercises the row-padding path and the >=2-tile (dual-TC) grid split.
    B2 = 10
    x2 = jax.random.normal(jax.random.PRNGKey(1), (B2, INPUT_DIM), jnp.float32)
    ez2 = jax.random.normal(jax.random.PRNGKey(2), (B2, Z_DIM), jnp.float32)
    ex2 = jax.random.normal(jax.random.PRNGKey(3), (B2, INPUT_DIM), jnp.float32)
    out2 = gaussian_mlp_vae_forward(x2, prepped, ez2, ex2)
    jax.block_until_ready(out2)
    ref2 = _reference_forward(x2, params, ez2, ex2)
    for a, b in zip(out2, ref2):
        assert a.shape == b.shape
        assert jnp.allclose(a, b, **TOL)

    print("KERNEL_OK")
</pallas_src>

<mosaic_0001>
module attributes {stable_mosaic.version = 11 : i64} {
  func.func @_vae_kernel(%arg0: i32, %arg1: memref<8x128xf32, #tpu.memory_space<vmem>>, %arg2: memref<128x128xbf16, #tpu.memory_space<vmem>>, %arg3: memref<1x128xf32, #tpu.memory_space<vmem>>, %arg4: memref<128x256xbf16, #tpu.memory_space<vmem>>, %arg5: memref<1x256xf32, #tpu.memory_space<vmem>>, %arg6: memref<128x128xbf16, #tpu.memory_space<vmem>>, %arg7: memref<1x128xf32, #tpu.memory_space<vmem>>, %arg8: memref<128x256xbf16, #tpu.memory_space<vmem>>, %arg9: memref<1x256xf32, #tpu.memory_space<vmem>>, %arg10: memref<8x128xf32, #tpu.memory_space<vmem>>, %arg11: memref<8x128xf32, #tpu.memory_space<vmem>>, %arg12: memref<8x128xf32, #tpu.memory_space<vmem>>, %arg13: memref<8x128xf32, #tpu.memory_space<vmem>>, %arg14: memref<8x128xf32, #tpu.memory_space<vmem>>) attributes {dimension_semantics = [#tpu.dimension_semantics<parallel>], iteration_bounds = array<i64: 1>, scalar_prefetch = 0 : i64, scratch_operands = 0 : i64, tpu.core_type = #tpu.core_type<tc>, window_params = [{transform_indices = @transform_0, window_bounds = array<i64: 8, 128>}, {pipeline_mode = #tpu.pipeline_mode<synchronous>, transform_indices = @transform_1, window_bounds = array<i64: 128, 128>}, {pipeline_mode = #tpu.pipeline_mode<synchronous>, transform_indices = @transform_2, window_bounds = array<i64: 1, 128>}, {pipeline_mode = #tpu.pipeline_mode<synchronous>, transform_indices = @transform_3, window_bounds = array<i64: 128, 256>}, {pipeline_mode = #tpu.pipeline_mode<synchronous>, transform_indices = @transform_4, window_bounds = array<i64: 1, 256>}, {pipeline_mode = #tpu.pipeline_mode<synchronous>, transform_indices = @transform_5, window_bounds = array<i64: 128, 128>}, {pipeline_mode = #tpu.pipeline_mode<synchronous>, transform_indices = @transform_6, window_bounds = array<i64: 1, 128>}, {pipeline_mode = #tpu.pipeline_mode<synchronous>, transform_indices = @transform_7, window_bounds = array<i64: 128, 256>}, {pipeline_mode = #tpu.pipeline_mode<synchronous>, transform_indices = @transform_8, window_bounds = array<i64: 1, 256>}, {transform_indices = @transform_9, window_bounds = array<i64: 8, 128>}, {transform_indices = @transform_10, window_bounds = array<i64: 8, 128>}, {transform_indices = @transform_11, window_bounds = array<i64: 8, 128>}, {transform_indices = @transform_12, window_bounds = array<i64: 8, 128>}, {transform_indices = @transform_13, window_bounds = array<i64: 8, 128>}]} {
    %c0 = arith.constant 0 : index
    %c0_0 = arith.constant 0 : index
    %0 = vector.load %arg1[%c0, %c0_0] : memref<8x128xf32, #tpu.memory_space<vmem>>, vector<8x128xf32>
    %1 = arith.truncf %0 : vector<8x128xf32> to vector<8x128xbf16>
    %c0_1 = arith.constant 0 : index
    %c0_2 = arith.constant 0 : index
    %2 = vector.load %arg2[%c0_1, %c0_2] : memref<128x128xbf16, #tpu.memory_space<vmem>>, vector<128x128xbf16>
    %cst = arith.constant dense<0.000000e+00> : vector<8x128xf32>
    %3 = tpu.matmul %1, %2, %cst {dimension_numbers = #tpu.dot_dimension_numbers<[1], [0], [0], [1], [0, 0, 1, 1], [], []>} : vector<8x128xbf16>, vector<128x128xbf16>, vector<8x128xf32> -> vector<8x128xf32>
    %c0_3 = arith.constant 0 : index
    %c0_4 = arith.constant 0 : index
    %4 = vector.load %arg3[%c0_3, %c0_4] : memref<1x128xf32, #tpu.memory_space<vmem>>, vector<1x128xf32>
    %5 = vector.broadcast %4 : vector<1x128xf32> to vector<8x128xf32>
    %6 = arith.addf %3, %5 : vector<8x128xf32>
    %cst_5 = arith.constant 0.000000e+00 : f32
    %7 = vector.broadcast %cst_5 : f32 to vector<8x128xf32>
    %8 = arith.maximumf %6, %7 : vector<8x128xf32>
    %9 = arith.truncf %8 : vector<8x128xf32> to vector<8x128xbf16>
    %c0_6 = arith.constant 0 : index
    %c0_7 = arith.constant 0 : index
    %10 = vector.load %arg4[%c0_6, %c0_7] : memref<128x256xbf16, #tpu.memory_space<vmem>>, vector<128x256xbf16>
    %cst_8 = arith.constant dense<0.000000e+00> : vector<8x256xf32>
    %11 = tpu.matmul %9, %10, %cst_8 {dimension_numbers = #tpu.dot_dimension_numbers<[1], [0], [0], [1], [0, 0, 1, 1], [], []>} : vector<8x128xbf16>, vector<128x256xbf16>, vector<8x256xf32> -> vector<8x256xf32>
    %c0_9 = arith.constant 0 : index
    %c0_10 = arith.constant 0 : index
    %12 = vector.load %arg5[%c0_9, %c0_10] : memref<1x256xf32, #tpu.memory_space<vmem>>, vector<1x256xf32>
    %13 = vector.broadcast %12 : vector<1x256xf32> to vector<8x256xf32>
    %14 = arith.addf %11, %13 : vector<8x256xf32>
    %15 = vector.extract_strided_slice %14 {offsets = [0, 0], sizes = [8, 128], strides = [1, 1]} : vector<8x256xf32> to vector<8x128xf32>
    %16 = vector.extract_strided_slice %14 {offsets = [0, 128], sizes = [8, 128], strides = [1, 1]} : vector<8x256xf32> to vector<8x128xf32>
    %cst_11 = arith.constant 5.000000e-01 : f32
    %17 = vector.broadcast %cst_11 : f32 to vector<8x128xf32>
    %18 = arith.mulf %16, %17 : vector<8x128xf32>
    %19 = math.exp %18 : vector<8x128xf32>
    %c0_12 = arith.constant 0 : index
    %c0_13 = arith.constant 0 : index
    %20 = vector.load %arg10[%c0_12, %c0_13] : memref<8x128xf32, #tpu.memory_space<vmem>>, vector<8x128xf32>
    %21 = arith.mulf %19, %20 : vector<8x128xf32>
    %22 = arith.addf %15, %21 : vector<8x128xf32>
    %23 = arith.truncf %22 : vector<8x128xf32> to vector<8x128xbf16>
    %c0_14 = arith.constant 0 : index
    %c0_15 = arith.constant 0 : index
    %24 = vector.load %arg6[%c0_14, %c0_15] : memref<128x128xbf16, #tpu.memory_space<vmem>>, vector<128x128xbf16>
    %cst_16 = arith.constant dense<0.000000e+00> : vector<8x128xf32>
    %25 = tpu.matmul %23, %24, %cst_16 {dimension_numbers = #tpu.dot_dimension_numbers<[1], [0], [0], [1], [0, 0, 1, 1], [], []>} : vector<8x128xbf16>, vector<128x128xbf16>, vector<8x128xf32> -> vector<8x128xf32>
    %c0_17 = arith.constant 0 : index
    %c0_18 = arith.constant 0 : index
    %26 = vector.load %arg7[%c0_17, %c0_18] : memref<1x128xf32, #tpu.memory_space<vmem>>, vector<1x128xf32>
    %27 = vector.broadcast %26 : vector<1x128xf32> to vector<8x128xf32>
    %28 = arith.addf %25, %27 : vector<8x128xf32>
    %29 = arith.truncf %28 : vector<8x128xf32> to vector<8x128xbf16>
    %c0_19 = arith.constant 0 : index
    %c0_20 = arith.constant 0 : index
    %30 = vector.load %arg8[%c0_19, %c0_20] : memref<128x256xbf16, #tpu.memory_space<vmem>>, vector<128x256xbf16>
    %cst_21 = arith.constant dense<0.000000e+00> : vector<8x256xf32>
    %31 = tpu.matmul %29, %30, %cst_21 {dimension_numbers = #tpu.dot_dimension_numbers<[1], [0], [0], [1], [0, 0, 1, 1], [], []>} : vector<8x128xbf16>, vector<128x256xbf16>, vector<8x256xf32> -> vector<8x256xf32>
    %c0_22 = arith.constant 0 : index
    %c0_23 = arith.constant 0 : index
    %32 = vector.load %arg9[%c0_22, %c0_23] : memref<1x256xf32, #tpu.memory_space<vmem>>, vector<1x256xf32>
    %33 = vector.broadcast %32 : vector<1x256xf32> to vector<8x256xf32>
    %34 = arith.addf %31, %33 : vector<8x256xf32>
    %35 = vector.extract_strided_slice %34 {offsets = [0, 0], sizes = [8, 128], strides = [1, 1]} : vector<8x256xf32> to vector<8x128xf32>
    %36 = vector.extract_strided_slice %34 {offsets = [0, 128], sizes = [8, 128], strides = [1, 1]} : vector<8x256xf32> to vector<8x128xf32>
    %cst_24 = arith.constant 5.000000e-01 : f32
    %37 = vector.broadcast %cst_24 : f32 to vector<8x128xf32>
    %38 = arith.mulf %36, %37 : vector<8x128xf32>
    %39 = math.exp %38 : vector<8x128xf32>
    %c0_25 = arith.constant 0 : index
    %c0_26 = arith.constant 0 : index
    %40 = vector.load %arg11[%c0_25, %c0_26] : memref<8x128xf32, #tpu.memory_space<vmem>>, vector<8x128xf32>
    %41 = arith.mulf %39, %40 : vector<8x128xf32>
    %42 = arith.addf %35, %41 : vector<8x128xf32>
    %cst_27 = arith.constant 5.000000e-01 : f32
    %43 = vector.broadcast %cst_27 : f32 to vector<8x128xf32>
    %44 = arith.mulf %42, %43 : vector<8x128xf32>
    %45 = math.tanh %44 : vector<8x128xf32>
    %cst_28 = arith.constant 1.000000e+00 : f32
    %46 = vector.broadcast %cst_28 : f32 to vector<8x128xf32>
    %47 = arith.addf %45, %46 : vector<8x128xf32>
    %cst_29 = arith.constant 5.000000e-01 : f32
    %48 = vector.broadcast %cst_29 : f32 to vector<8x128xf32>
    %49 = arith.mulf %48, %47 : vector<8x128xf32>
    %c0_30 = arith.constant 0 : index
    %c0_31 = arith.constant 0 : index
    %50 = vector.load %arg12[%c0_30, %c0_31] : memref<8x128xf32, #tpu.memory_space<vmem>>, vector<8x128xf32>
    tpu.vector_store %arg12[%c0_30, %c0_31], %49 {strides = array<i32>} : memref<8x128xf32, #tpu.memory_space<vmem>>, vector<8x128xf32>,
    %c0_32 = arith.constant 0 : index
    %c0_33 = arith.constant 0 : index
    %51 = vector.load %arg13[%c0_32, %c0_33] : memref<8x128xf32, #tpu.memory_space<vmem>>, vector<8x128xf32>
    tpu.vector_store %arg13[%c0_32, %c0_33], %15 {strides = array<i32>} : memref<8x128xf32, #tpu.memory_space<vmem>>, vector<8x128xf32>,
    %c0_34 = arith.constant 0 : index
    %c0_35 = arith.constant 0 : index
    %52 = vector.load %arg14[%c0_34, %c0_35] : memref<8x128xf32, #tpu.memory_space<vmem>>, vector<8x128xf32>
    tpu.vector_store %arg14[%c0_34, %c0_35], %16 {strides = array<i32>} : memref<8x128xf32, #tpu.memory_space<vmem>>, vector<8x128xf32>,
    return
  }
  func.func @transform_0(%arg0: i32) -> (i32, i32) {
    %c0_i32 = arith.constant 0 : i32
    %c0_i32_0 = arith.constant 0 : i32
    return %arg0, %c0_i32 : i32, i32
  }
  func.func @transform_1(%arg0: i32) -> (i32, i32) {
    %c0_i32 = arith.constant 0 : i32
    %c0_i32_0 = arith.constant 0 : i32
    %c0_i32_1 = arith.constant 0 : i32
    return %c0_i32, %c0_i32_0 : i32, i32
  }
  func.func @transform_2(%arg0: i32) -> (i32, i32) {
    %c0_i32 = arith.constant 0 : i32
    %c0_i32_0 = arith.constant 0 : i32
    %c0_i32_1 = arith.constant 0 : i32
    return %c0_i32, %c0_i32_0 : i32, i32
  }
  func.func @transform_3(%arg0: i32) -> (i32, i32) {
    %c0_i32 = arith.constant 0 : i32
    %c0_i32_0 = arith.constant 0 : i32
    %c0_i32_1 = arith.constant 0 : i32
    return %c0_i32, %c0_i32_0 : i32, i32
  }
  func.func @transform_4(%arg0: i32) -> (i32, i32) {
    %c0_i32 = arith.constant 0 : i32
    %c0_i32_0 = arith.constant 0 : i32
    %c0_i32_1 = arith.constant 0 : i32
    return %c0_i32, %c0_i32_0 : i32, i32
  }
  func.func @transform_5(%arg0: i32) -> (i32, i32) {
    %c0_i32 = arith.constant 0 : i32
    %c0_i32_0 = arith.constant 0 : i32
    %c0_i32_1 = arith.constant 0 : i32
    return %c0_i32, %c0_i32_0 : i32, i32
  }
  func.func @transform_6(%arg0: i32) -> (i32, i32) {
    %c0_i32 = arith.constant 0 : i32
    %c0_i32_0 = arith.constant 0 : i32
    %c0_i32_1 = arith.constant 0 : i32
    return %c0_i32, %c0_i32_0 : i32, i32
  }
  func.func @transform_7(%arg0: i32) -> (i32, i32) {
    %c0_i32 = arith.constant 0 : i32
    %c0_i32_0 = arith.constant 0 : i32
    %c0_i32_1 = arith.constant 0 : i32
    return %c0_i32, %c0_i32_0 : i32, i32
  }
  func.func @transform_8(%arg0: i32) -> (i32, i32) {
    %c0_i32 = arith.constant 0 : i32
    %c0_i32_0 = arith.constant 0 : i32
    %c0_i32_1 = arith.constant 0 : i32
    return %c0_i32, %c0_i32_0 : i32, i32
  }
  func.func @transform_9(%arg0: i32) -> (i32, i32) {
    %c0_i32 = arith.constant 0 : i32
    %c0_i32_0 = arith.constant 0 : i32
    return %arg0, %c0_i32 : i32, i32
  }
  func.func @transform_10(%arg0: i32) -> (i32, i32) {
    %c0_i32 = arith.constant 0 : i32
    %c0_i32_0 = arith.constant 0 : i32
    return %arg0, %c0_i32 : i32, i32
  }
  func.func @transform_11(%arg0: i32) -> (i32, i32) {
    %c0_i32 = arith.constant 0 : i32
    %c0_i32_0 = arith.constant 0 : i32
    return %arg0, %c0_i32 : i32, i32
  }
  func.func @transform_12(%arg0: i32) -> (i32, i32) {
    %c0_i32 = arith.constant 0 : i32
    %c0_i32_0 = arith.constant 0 : i32
    return %arg0, %c0_i32 : i32, i32
  }
  func.func @transform_13(%arg0: i32) -> (i32, i32) {
    %c0_i32 = arith.constant 0 : i32
    %c0_i32_0 = arith.constant 0 : i32
    return %arg0, %c0_i32 : i32, i32
  }
}

</mosaic_0001>

<bundles_post_ra>
// kernel: gaussian_mlp_vae_forward.1
= control target key start
LH: loop header
LB: loop body
LE: loop exit
PB: predicated region body
PF: predicated region fallthrough
CT: control target
= control target key end

     0   :  { %19 = vsyncpa [#allocation3], 0  ;;  %s1382_s0 = inlined_call_operand.vmem [shape: f32[8,128], index: 0, kind: input, shape index: {}]   ;;  %s1383_s1 = inlined_call_operand.vmem [shape: bf16[128,128], index: 1, kind: input, shape index: {}]   ;;  %s1384_s2 = inlined_call_operand.vmem [shape: f32[1,128], index: 2, kind: input, shape index: {}]   ;;  %s1385_s3 = inlined_call_operand.hbm [shape: bf16[128,256], index: 3, kind: input, shape index: {}]   ;;  %s1386_s4 = inlined_call_operand.hbm [shape: f32[1,256], index: 4, kind: input, shape index: {}]   ;;  %s1387_s5 = inlined_call_operand.hbm [shape: bf16[128,128], index: 5, kind: input, shape index: {}]   ;;  %s1388_s6 = inlined_call_operand.hbm [shape: f32[1,128], index: 6, kind: input, shape index: {}]   ;;  %s1389_s7 = inlined_call_operand.hbm [shape: bf16[128,256], index: 7, kind: input, shape index: {}]   ;;  %s1390_s8 = inlined_call_operand.hbm [shape: f32[1,256], index: 8, kind: input, shape index: {}]   ;;  %s1391_s9 = inlined_call_operand.vmem [shape: f32[8,128], index: 9, kind: input, shape index: {}]   ;;  %s1392_s10 = inlined_call_operand.vmem [shape: f32[8,128], index: 10, kind: input, shape index: {}]   ;;  %s1393_s11 = inlined_call_operand.hbm [shape: f32[8,128], index: 11, kind: output, shape index: {0}]   ;;  %s1394_s12 = inlined_call_operand.hbm [shape: f32[8,128], index: 12, kind: output, shape index: {1}]   ;;  %s1395_s13 = inlined_call_operand.hbm [shape: f32[8,128], index: 13, kind: output, shape index: {2}]  }
   0x1   :  { %20 = vsyncpa [#allocation6], 0 }
   0x2   :  { %21 = vsyncpa [#allocation9], 0 }
   0x3   :  { %22 = vsyncpa [#allocation12], 0 }
   0x4   :  { %23 = vsyncpa [#allocation4], 0 }
   0x5   :  { %24 = vsyncpa [#allocation15], 0  ;;  %s1114_s25 = smov [#allocation5]   ;;  %s1115_s27 = smov [#allocation8]  }
   0x6   :  { %s49_s26 = sshll.u32 %s1114_s25, 4  ;;  %s71_s28 = sshll.u32 %s1115_s27, 4  ;;  %s50_s26 = int_to_ptr.vmem [resolvable:$true] %s49_s26  ;;  %s72_s28 = int_to_ptr.vmem [resolvable:$true] %s71_s28 }
   0x7   :  { %s904_s14 = scalar_lea.hbm %s1386_s4, 32 }
   0x8   :  { %p905_p0 = scmp.ne.s32.totalorder %s1386_s4, %s904_s14  ;;  %p908_p1 = scmp.lt.u32.totalorder %s904_s14, %s1386_s4 }
   0xa   :  { %p910_p2 = pnand %p908_p1, %p905_p0 }
   0xc   :  { %913 = shalt.err (!%p910_p2)
}
   0xd   :  { %s914_s19 = scalar_lea.vmem %s50_s26, 32  ;;  %p919_p4 = scmp.lt.s32.totalorder %s50_s26, %s50_s26 }
   0xe   :  { %p915_p3 = scmp.ne.s32.totalorder %s50_s26, %s914_s19  ;;  %p920_p5 = scmp.lt.s32.totalorder %s914_s19, %s914_s19 }
  0x10   :  { %p921_p6 = por %p920_p5, %p919_p4 }
  0x12   :  { %p922_p7 = pnand %p921_p6, %p915_p3 }
  0x14   :  { %925 = shalt.err (!%p922_p7)
}
  0x15   :  { %52 = dma.hbm_to_vmem [thread:$0]  %s1386_s4, 32, %s50_s26, [#allocation6]  }
  0x16   :  { %s926_s24 = scalar_lea.hbm %s1388_s6, 16 }
  0x17   :  { %p927_p8 = scmp.ne.s32.totalorder %s1388_s6, %s926_s24  ;;  %p930_p9 = scmp.lt.u32.totalorder %s926_s24, %s1388_s6 }
  0x19   :  { %p932_p10 = pnand %p930_p9, %p927_p8 }
  0x1b   :  { %935 = shalt.err (!%p932_p10)
}
  0x1c   :  { %s936_s14 = scalar_lea.vmem %s72_s28, 16  ;;  %s940_s15 = scalar_lea.vmem %s72_s28, 32 }
  0x1d   :  { %p937_p11 = scmp.ne.s32.totalorder %s72_s28, %s936_s14  ;;  %p941_p12 = scmp.lt.s32.totalorder %s72_s28, %s72_s28 }
  0x1e   :  { %p942_p13 = scmp.lt.s32.totalorder %s940_s15, %s936_s14 }
  0x20   :  { %p943_p0 = por %p942_p13, %p941_p12 }
  0x22   :  { %p944_p1 = pnand %p943_p0, %p937_p11 }
  0x24   :  { %947 = shalt.err (!%p944_p1)
}
  0x25   :  { %74 = dma.hbm_to_vmem [thread:$0]  %s1388_s6, 16, %s72_s28, [#allocation9]  }
  0x26   :  { %s1116_s16 = smov [#allocation2]   ;;  %s948_s20 = scalar_lea.hbm %s1385_s3, 2048 }
  0x27   :  { %s36_s17 = sshll.u32 %s1116_s16, 4  ;;  %p949_p2 = scmp.ne.s32.totalorder %s1385_s3, %s948_s20  ;;  %s37_s17 = int_to_ptr.vmem [resolvable:$true] %s36_s17 }
  0x28   :  { %p952_p3 = scmp.lt.u32.totalorder %s948_s20, %s1385_s3 }
  0x2a   :  { %p954_p4 = pnand %p952_p3, %p949_p2 }
  0x2c   :  { %957 = shalt.err (!%p954_p4)
}
  0x2d   :  { %s958_s25 = scalar_lea.vmem %s37_s17, 2048  ;;  %p963_p6 = scmp.lt.s32.totalorder %s37_s17, %s37_s17 }
  0x2e   :  { %p959_p5 = scmp.ne.s32.totalorder %s37_s17, %s958_s25  ;;  %p964_p7 = scmp.lt.s32.totalorder %s958_s25, %s958_s25 }
  0x30   :  { %p965_p8 = por %p964_p7, %p963_p6 }
  0x32   :  { %p966_p9 = pnand %p965_p8, %p959_p5 }
  0x34   :  { %969 = shalt.err (!%p966_p9)
}
  0x35   :  { %s1117_s6 = smov 128   ;;  %s1118_s28 = smov 8  }
  0x36   :  { %42 = dma.hbm_to_vmem [thread:$0]  %s1385_s3, 2048, %s37_s17, [#allocation3], %s1117_s6, %s1117_s6, %s1118_s28  }
  0x37   :  { %s1119_s30 = smov [#allocation7]   ;;  %s970_s26 = scalar_lea.hbm %s1387_s5, 1024 }
  0x38   :  { %s58_s14 = sshll.u32 %s1119_s30, 4  ;;  %p971_p10 = scmp.ne.s32.totalorder %s1387_s5, %s970_s26  ;;  %s59_s14 = int_to_ptr.vmem [resolvable:$true] %s58_s14 }
  0x39   :  { %p974_p11 = scmp.lt.u32.totalorder %s970_s26, %s1387_s5 }
  0x3b   :  { %p976_p12 = pnand %p974_p11, %p971_p10 }
  0x3d   :  { %979 = shalt.err (!%p976_p12)
}
  0x3e   :  { %s980_s21 = scalar_lea.vmem %s59_s14, 1024  ;;  %p985_p0 = scmp.lt.s32.totalorder %s59_s14, %s59_s14 }
  0x3f   :  { %p981_p13 = scmp.ne.s32.totalorder %s59_s14, %s980_s21  ;;  %p986_p1 = scmp.lt.s32.totalorder %s980_s21, %s980_s21 }
  0x41   :  { %p987_p2 = por %p986_p1, %p985_p0 }
  0x43   :  { %p988_p3 = pnand %p987_p2, %p981_p13 }
  0x45   :  { %991 = shalt.err (!%p988_p3)
}
  0x46   :  { %s1120_s3 = smov 64   ;;  %s1121_s17 = smov 4  }
  0x47   :  { %64 = dma.hbm_to_vmem [thread:$0]  %s1387_s5, 1024, %s59_s14, [#allocation6], %s1120_s3, %s1120_s3, %s1121_s17  }
  0x48   :  { %s1122_s24 = smov [#allocation10]   ;;  %s1123_s27 = smov [#allocation11]  }
  0x49   :  { %s80_s25 = sshll.u32 %s1122_s24, 4  ;;  %s93_s29 = sshll.u32 %s1123_s27, 4  ;;  %s81_s25 = int_to_ptr.vmem [resolvable:$true] %s80_s25  ;;  %s94_s29 = int_to_ptr.vmem [resolvable:$true] %s93_s29 }
  0x4a   :  { %s992_s4 = scalar_lea.hbm %s1389_s7, 2048 }
  0x4b   :  { %p993_p4 = scmp.ne.s32.totalorder %s1389_s7, %s992_s4  ;;  %p996_p5 = scmp.lt.u32.totalorder %s992_s4, %s1389_s7 }
  0x4d   :  { %p998_p6 = pnand %p996_p5, %p993_p4 }
  0x4f   :  { %1001 = shalt.err (!%p998_p6)
}
  0x50   :  { %s1002_s5 = scalar_lea.vmem %s81_s25, 2048  ;;  %p1007_p8 = scmp.lt.s32.totalorder %s81_s25, %s81_s25 }
  0x51   :  { %p1003_p7 = scmp.ne.s32.totalorder %s81_s25, %s1002_s5  ;;  %p1008_p9 = scmp.lt.s32.totalorder %s1002_s5, %s1002_s5 }
  0x53   :  { %p1009_p10 = por %p1008_p9, %p1007_p8 }
  0x55   :  { %p1010_p11 = pnand %p1009_p10, %p1003_p7 }
  0x57   :  { %1013 = shalt.err (!%p1010_p11)
}
  0x58   :  { %86 = dma.hbm_to_vmem [thread:$0]  %s1389_s7, 2048, %s81_s25, [#allocation9], %s1117_s6, %s1117_s6, %s1118_s28  }
  0x59   :  { %s1014_s17 = scalar_lea.hbm %s1390_s8, 32 }
  0x5a   :  { %p1015_p12 = scmp.ne.s32.totalorder %s1390_s8, %s1014_s17  ;;  %p1018_p13 = scmp.lt.u32.totalorder %s1014_s17, %s1390_s8 }
  0x5c   :  { %p1020_p0 = pnand %p1018_p13, %p1015_p12 }
  0x5e   :  { %1023 = shalt.err (!%p1020_p0)
}
  0x5f   :  { %s1024_s30 = scalar_lea.vmem %s94_s29, 32  ;;  %p1029_p2 = scmp.lt.s32.totalorder %s94_s29, %s94_s29 }
  0x60   :  { %p1025_p1 = scmp.ne.s32.totalorder %s94_s29, %s1024_s30  ;;  %p1030_p3 = scmp.lt.s32.totalorder %s1024_s30, %s1024_s30 }
  0x62   :  { %p1031_p4 = por %p1030_p3, %p1029_p2 }
  0x64   :  { %p1032_p5 = pnand %p1031_p4, %p1025_p1 }
  0x66   :  { %1035 = shalt.err (!%p1032_p5)
}
  0x67   :  { %96 = dma.hbm_to_vmem [thread:$0]  %s1390_s8, 32, %s94_s29, [#allocation12]  }
  0x68   :  { %1102 = dma.done.wait [#allocation3], 2048  }
  0x69   :  { %1103 = vsyncadd [#allocation3], 4294965248 }
  0x6a   :  { %1104 = dma.done.wait [#allocation6], 1056  }
  0x6b   :  { %1105 = vsyncadd [#allocation6], 4294966240 }
  0x6c   :  { %1106 = dma.done.wait [#allocation9], 2064  }
  0x6d   :  { %1107 = vsyncadd [#allocation9], 4294965232 }
  0x6e   :  { %1108 = dma.done.wait [#allocation12], 32  }
  0x6f   :  { %1109 = vsyncadd [#allocation12], 4294967264  ;;  %v1124_v0 = vmov 0.0   ;;  %vm1125_vm0 = vmmov 0   ;;  %v834_v1 = vld [vmem:[%s1383_s1] sm:$0xff]   ;;  %v835_v2 = vld [vmem:[%s1383_s1 + $0x8] sm:$0xff]   ;;  %v253_v58 = vlaneseq }
  0x70   :  { %778 = vmatprep.subr.bf16.mxu0 %v1124_v0  ;;  %794 = vmatprep.mubr.msk.bf16.mxu0 %vm1125_vm0, %v1124_v0  ;;  %v836_v3 = vld [vmem:[%s1383_s1 + $0x10] sm:$0xff]   ;;  %v837_v6 = vld [vmem:[%s1383_s1 + $0x18] sm:$0xff]   ;;  %v845_v7 = vld [vmem:[#allocation2 + $0x14] ss:$8 sps:$4 sm:$0xff]   ;;  %v1126_v27 = vmov 0   ;;  %s1127_s27 = smov [#allocation14]  }
  0x71   :  { %779 = vmatpush3.bf16.msra.mxu0 %v834_v1  ;;  %v842_v4 = vld [vmem:[#allocation2 + $0x4] ss:$8 sps:$4 sm:$0xff]   ;;  %v844_v5 = vld [vmem:[#allocation2] ss:$8 sps:$4 sm:$0xff]   ;;  %v847_v8 = vld [vmem:[#allocation2 + $0x10] ss:$8 sps:$4 sm:$0xff]   ;;  %375 = vmatprep.mubr.bf16.mxu1 %v1126_v27 }
  0x72   :  { %780 = vmatprep.subr.bf16.mxu0 %v1124_v0  ;;  %343 = vmatprep.subr.bf16.mxu1 %v842_v4  ;;  %v848_v9 = vld [vmem:[#allocation2 + $0x24] ss:$8 sps:$4 sm:$0xff]   ;;  %v838_v10 = vld [vmem:[%s1383_s1 + $0x20] sm:$0xff]   ;;  %v850_v11 = vld [vmem:[#allocation2 + $0x20] ss:$8 sps:$4 sm:$0xff]   ;;  %v1328_v59 = vshrl.u32 %v253_v58, 7 }
  0x73   :  { %344 = vmatpush1.bf16.msra.mxu1 %v844_v5  ;;  %v839_v12 = vld [vmem:[%s1383_s1 + $0x28] sm:$0xff]   ;;  %v854_v15 = vld [vmem:[#allocation2 + $0x44] ss:$8 sps:$4 sm:$0xff]   ;;  %v856_v17 = vld [vmem:[#allocation2 + $0x40] ss:$8 sps:$4 sm:$0xff]   ;;  %s681_s30 = sshll.u32 %s1127_s27, 4  ;;  %s682_s30 = int_to_ptr.vmem [resolvable:$true] %s681_s30 }
  0x74   :  { %345 = vmatprep.subr.bf16.mxu1 %v845_v7  ;;  %v851_v13 = vld [vmem:[#allocation2 + $0x34] ss:$8 sps:$4 sm:$0xff]   ;;  %v853_v14 = vld [vmem:[#allocation2 + $0x30] ss:$8 sps:$4 sm:$0xff]   ;;  %v840_v16 = vld [vmem:[%s1383_s1 + $0x30] sm:$0xff]   ;;  %v255_v60 = vsub.s32 0, %v1328_v59  ;;  %p1041_p7 = scmp.lt.s32.totalorder %s682_s30, %s682_s30 }
  0x75   :  { %781 = vmatpush3.bf16.msra.mxu0 %v835_v2  ;;  %v857_v18 = vld [vmem:[#allocation2 + $0x54] ss:$8 sps:$4 sm:$0xff]   ;;  %v841_v19 = vld [vmem:[%s1383_s1 + $0x38] sm:$0xff]   ;;  %v859_v21 = vld [vmem:[#allocation2 + $0x50] ss:$8 sps:$4 sm:$0xff]   ;;  %v259_v62 = vsub.s32 1, %v1328_v59 }
  0x76   :  { %782 = vmatprep.subr.bf16.mxu0 %v1124_v0  ;;  %v120_v20 = vld [vmem:[%s1382_s0] sm:$0xff]  ;;  %v860_v23 = vld [vmem:[#allocation2 + $0x64] ss:$8 sps:$4 sm:$0xff]   ;;  %v862_v24 = vld [vmem:[#allocation2 + $0x60] ss:$8 sps:$4 sm:$0xff]  }
  0x77   :  { %346 = vmatpush1.bf16.msra.mxu1 %v847_v8  ;;  %v121_v22 = vpack.c.bf16 %v120_v20, %v120_v20  ;;  %v863_v25 = vld [vmem:[#allocation2 + $0x74] ss:$8 sps:$4 sm:$0xff]   ;;  %v865_v26 = vld [vmem:[#allocation2 + $0x70] ss:$8 sps:$4 sm:$0xff]   ;;  %v866_v28 = vld [vmem:[#allocation7] sm:$0xff]  }
  0x78   :  { %347 = vmatprep.subr.bf16.mxu1 %v848_v9  ;;  %v867_v29 = vld [vmem:[#allocation7 + $0x8] sm:$0xff]   ;;  %v868_v38 = vld [vmem:[#allocation7 + $0x10] sm:$0xff]   ;;  %v869_v39 = vld [vmem:[#allocation7 + $0x18] sm:$0xff]  }
  0x79   :  { %783 = vmatpush3.bf16.msra.mxu0 %v836_v3  ;;  %v710_v30 = vld [vmem:[%s1384_s2] ss:$0 sm:$0xff]  ;;  %v870_v40 = vld [vmem:[#allocation7 + $0x20] sm:$0xff]   ;;  %v872_v42 = vld [vmem:[#allocation7 + $0x30] sm:$0xff]  }
  0x7a   :  { %784 = vmatprep.subr.bf16.mxu0 %v1124_v0  ;;  %v871_v41 = vld [vmem:[#allocation7 + $0x28] sm:$0xff]   ;;  %v873_v43 = vld [vmem:[#allocation7 + $0x38] sm:$0xff]  }
  0x7b   :  { %348 = vmatpush1.bf16.msra.mxu1 %v850_v11  ;;  %v874_v44 = vld [vmem:[#allocation10] ss:$8 sps:$4 sm:$0xff]   ;;  %v876_v45 = vld [vmem:[#allocation10 + $0x4] ss:$8 sps:$4 sm:$0xff]   ;;  %v879_v46 = vld [vmem:[#allocation10 + $0x14] ss:$8 sps:$4 sm:$0xff]  }
  0x7c   :  { %349 = vmatprep.subr.bf16.mxu1 %v851_v13  ;;  %v877_v47 = vld [vmem:[#allocation10 + $0x10] ss:$8 sps:$4 sm:$0xff]   ;;  %v882_v48 = vld [vmem:[#allocation10 + $0x24] ss:$8 sps:$4 sm:$0xff]   ;;  %v880_v49 = vld [vmem:[#allocation10 + $0x20] ss:$8 sps:$4 sm:$0xff]  }
  0x7d   :  { %785 = vmatpush3.bf16.msra.mxu0 %v837_v6  ;;  %v885_v50 = vld [vmem:[#allocation10 + $0x34] ss:$8 sps:$4 sm:$0xff]   ;;  %v883_v51 = vld [vmem:[#allocation10 + $0x30] ss:$8 sps:$4 sm:$0xff]   ;;  %v888_v52 = vld [vmem:[#allocation10 + $0x44] ss:$8 sps:$4 sm:$0xff]  }
  0x7e   :  { %786 = vmatprep.subr.bf16.mxu0 %v1124_v0  ;;  %v886_v53 = vld [vmem:[#allocation10 + $0x40] ss:$8 sps:$4 sm:$0xff]   ;;  %v891_v54 = vld [vmem:[#allocation10 + $0x54] ss:$8 sps:$4 sm:$0xff]   ;;  %v889_v55 = vld [vmem:[#allocation10 + $0x50] ss:$8 sps:$4 sm:$0xff]  }
  0x7f   :  { %350 = vmatpush1.bf16.msra.mxu1 %v853_v14  ;;  %v894_v56 = vld [vmem:[#allocation10 + $0x64] ss:$8 sps:$4 sm:$0xff]   ;;  %v892_v57 = vld [vmem:[#allocation10 + $0x60] ss:$8 sps:$4 sm:$0xff]   ;;  %v251_v61 = vld [vmem:[#allocation5] sm:$0x3] }
  0x80   :  { %351 = vmatprep.subr.bf16.mxu1 %v854_v15  ;;  %v256_v63 = vrot.slane %v251_v61, %v255_v60  ;;  %v387_v9 = vld [vmem:[%s1391_s9] sm:$0xff]  ;;  %v897_v14 = vld [vmem:[#allocation10 + $0x74] ss:$8 sps:$4 sm:$0xff]   ;;  %s1036_s9 = scalar_lea.vmem %s682_s30, 128 }
  0x81   :  { %787 = vmatpush3.bf16.msra.mxu0 %v838_v10  ;;  %v895_v15 = vld [vmem:[#allocation10 + $0x70] ss:$8 sps:$4 sm:$0xff]   ;;  %p1037_p6 = scmp.ne.s32.totalorder %s682_s30, %s1036_s9  ;;  %p1042_p8 = scmp.lt.s32.totalorder %s1036_s9, %s1036_s9 }
  0x82   :  { %788 = vmatprep.subr.bf16.mxu0 %v1124_v0 }
  0x83   :  { %352 = vmatpush1.bf16.msra.mxu1 %v856_v17  ;;  %p1043_p9 = por %p1042_p8, %p1041_p7 }
  0x84   :  { %353 = vmatprep.subr.bf16.mxu1 %v857_v18 }
  0x85   :  { %789 = vmatpush3.bf16.msra.mxu0 %v839_v12  ;;  %p1044_p10 = pnand %p1043_p9, %p1037_p6 }
  0x86   :  { %790 = vmatprep.subr.bf16.mxu0 %v1124_v0 }
  0x87   :  { %354 = vmatpush1.bf16.msra.mxu1 %v859_v21 }
  0x88   :  { %355 = vmatprep.subr.bf16.mxu1 %v860_v23 }
  0x89   :  { %791 = vmatpush3.bf16.msra.mxu0 %v840_v16  ;;  %v735_v16 = vld [vmem:[#allocation8] ss:$0 sm:$0xff] }
  0x8a   :  { %792 = vmatprep.subr.bf16.mxu0 %v1124_v0 }
  0x8b   :  { %356 = vmatpush1.bf16.msra.mxu1 %v862_v24 }
  0x8c   :  { %357 = vmatprep.subr.bf16.mxu1 %v863_v25 }
  0x8d   :  { %793 = vmatpush3.bf16.msra.mxu0 %v841_v19 }
  0x8e   :  { %798 = vmatprep.subr.bf16.mxu0 %v1124_v0 }
  0x8f   :  { %358 = vmatpush1.bf16.msra.mxu1 %v865_v26 }
  0x90   :  { %795 = vmatmul.mubr.bf16.vlgmr.msra.gmra.mrb[0].mxu0 %v121_v22  ;;  %611 = vmatprep.subr.bf16.mxu1 %v876_v45 }
  0x91   :  { %814 = vmatprep.mubr.msk.bf16.mxu0 %vm1125_vm0, %v1124_v0  ;;  %799 = vmatpush3.bf16.msra.mxu0 %v866_v28 }
  0x92   :  { %800 = vmatprep.subr.bf16.mxu0 %v1124_v0 }
  0x95   :  { %801 = vmatpush3.bf16.msra.mxu0 %v867_v29 }
  0x96   :  { %802 = vmatprep.subr.bf16.mxu0 %v1124_v0 }
  0x99   :  { %803 = vmatpush3.bf16.msra.mxu0 %v868_v38 }
  0x9a   :  { %804 = vmatprep.subr.bf16.mxu0 %v1124_v0 }
  0x9d   :  { %805 = vmatpush3.bf16.msra.mxu0 %v869_v39 }
  0x9e   :  { %806 = vmatprep.subr.bf16.mxu0 %v1124_v0 }
  0xa1   :  { %807 = vmatpush3.bf16.msra.mxu0 %v870_v40 }
  0xa2   :  { %808 = vmatprep.subr.bf16.mxu0 %v1124_v0 }
  0xa5   :  { %809 = vmatpush3.bf16.msra.mxu0 %v871_v41 }
  0xa6   :  { %810 = vmatprep.subr.bf16.mxu0 %v1124_v0 }
  0xa9   :  { %811 = vmatpush3.bf16.msra.mxu0 %v872_v42 }
  0xaa   :  { %812 = vmatprep.subr.bf16.mxu0 %v1124_v0  ;;  %v260_v0 = vrot.slane %v251_v61, %v259_v62 }
  0xad   :  { %813 = vmatpush3.bf16.msra.mxu0 %v873_v43 }
 0x163   :  { %v227_v31 = vpop.f32.mrb[0].mxu0 }
 0x164   :  { %v228_v32 = vadd.f32 %v710_v30, %v227_v31  ;;  %v796_v33 = vpop.f32.mrb[1].mxu0 }
 0x165   :  { %v230_v34 = vpop.f32.mrb[2].mxu0 }
 0x166   :  { %v233_v35 = vmax.f32 %v228_v32, 0.0  ;;  %v797_v36 = vpop.f32.mrb[3].mxu0 }
 0x168   :  { %v234_v37 = vpack.c.bf16 %v233_v35, %v233_v35 }
 0x16a   :  { %376 = vmatmul.mubr.bf16.vlgmr.msra.gmra.mrb[0].mxu1 %v234_v37 }
 0x16b   :  { %643 = vmatprep.mubr.bf16.mxu1 %v1126_v27  ;;  %612 = vmatpush1.bf16.msra.mxu1 %v874_v44 }
 0x16c   :  { %613 = vmatprep.subr.bf16.mxu1 %v879_v46 }
 0x16f   :  { %614 = vmatpush1.bf16.msra.mxu1 %v877_v47 }
 0x170   :  { %615 = vmatprep.subr.bf16.mxu1 %v882_v48 }
 0x173   :  { %616 = vmatpush1.bf16.msra.mxu1 %v880_v49 }
 0x174   :  { %617 = vmatprep.subr.bf16.mxu1 %v885_v50 }
 0x177   :  { %618 = vmatpush1.bf16.msra.mxu1 %v883_v51 }
 0x178   :  { %619 = vmatprep.subr.bf16.mxu1 %v888_v52 }
 0x17b   :  { %620 = vmatpush1.bf16.msra.mxu1 %v886_v53 }
 0x17c   :  { %621 = vmatprep.subr.bf16.mxu1 %v891_v54 }
 0x17f   :  { %622 = vmatpush1.bf16.msra.mxu1 %v889_v55 }
 0x180   :  { %623 = vmatprep.subr.bf16.mxu1 %v894_v56 }
 0x183   :  { %624 = vmatpush1.bf16.msra.mxu1 %v892_v57 }
 0x184   :  { %625 = vmatprep.subr.bf16.mxu1 %v897_v14 }
 0x187   :  { %626 = vmatpush1.bf16.msra.mxu1 %v895_v15 }
 0x23d   :  { %v377_v1 = vpop.f32.mrb[0].mxu1 }
 0x23e   :  { %v378_v2 = vadd.f32 %v377_v1, %v256_v63  ;;  %v379_v3 = vpop.f32.mrb[1].mxu1 }
 0x23f   :  { %v380_v4 = vadd.f32 %v379_v3, %v260_v0  ;;  %v381_v5 = vpop.f32.mrb[2].mxu1 }
 0x240   :  { %663 = vst [vmem:[#allocation14] sm:$0xff] %v378_v2  ;;  %v382_v6 = vpop.f32.mrb[3].mxu1 }
 0x241   :  { %v384_v7 = vmul.f32 0.5, %v380_v4  ;;  %664 = vst [vmem:[#allocation16] sm:$0xff] %v380_v4 }
 0x243   :  { %v385_v8 = vmul.f32 1.442695, %v384_v7 }
 0x245   :  { %898 = vpow2.f32 %v385_v8 }
 0x24f   :  { %v899_v10 = vpop.eup %898 }
 0x250   :  { %v388_v11 = vmul.f32 %v899_v10, %v387_v9 }
 0x252   :  { %v389_v12 = vadd.f32 %v388_v11, %v378_v2 }
 0x254   :  { %v390_v13 = vpack.c.bf16 %v389_v12, %v389_v12 }
 0x256   :  { %815 = vmatmul.mubr.bf16.vlgmr.msra.gmra.mrb[4].mxu0 %v390_v13 }
 0x329   :  { %v496_v17 = vpop.f32.mrb[4].mxu0 }
 0x32a   :  { %v497_v18 = vadd.f32 %v735_v16, %v496_v17  ;;  %v816_v19 = vpop.f32.mrb[5].mxu0 }
 0x32b   :  { %v499_v20 = vpop.f32.mrb[6].mxu0 }
 0x32c   :  { %v502_v21 = vpack.c.bf16 %v497_v18, %v497_v18  ;;  %v817_v22 = vpop.f32.mrb[7].mxu0 }
 0x32e   :  { %644 = vmatmul.mubr.bf16.vlgmr.msra.gmra.mrb[4].mxu1 %v502_v21 }
 0x32f   :  { %1047 = shalt.err (!%p1044_p10)
}
 0x330   :  { %s1048_s28 = scalar_lea.hbm %s1394_s12, 128 }
 0x331   :  { %p1049_p11 = scmp.ne.s32.totalorder %s1394_s12, %s1048_s28  ;;  %p1052_p12 = scmp.lt.u32.totalorder %s1048_s28, %s1394_s12 }
 0x333   :  { %p1054_p13 = pnand %p1052_p12, %p1049_p11 }
 0x335   :  { %1057 = shalt.err (!%p1054_p13)
}
 0x336   :  { %684 = dma.vmem_to_hbm [thread:$0]  %s682_s30, 128, %s1394_s12, [#allocation15]  }
 0x337   :  { %s1128_s16 = smov [#allocation16]  }
 0x338   :  { %s691_s18 = sshll.u32 %s1128_s16, 4  ;;  %s692_s18 = int_to_ptr.vmem [resolvable:$true] %s691_s18 }
 0x339   :  { %s1058_s19 = scalar_lea.vmem %s692_s18, 128  ;;  %p1063_p1 = scmp.lt.s32.totalorder %s692_s18, %s692_s18 }
 0x33a   :  { %p1059_p0 = scmp.ne.s32.totalorder %s692_s18, %s1058_s19  ;;  %p1064_p2 = scmp.lt.s32.totalorder %s1058_s19, %s1058_s19 }
 0x33c   :  { %p1065_p3 = por %p1064_p2, %p1063_p1 }
 0x33e   :  { %p1066_p4 = pnand %p1065_p3, %p1059_p0 }
 0x340   :  { %1069 = shalt.err (!%p1066_p4)
}
 0x341   :  { %s1070_s20 = scalar_lea.hbm %s1395_s13, 128 }
 0x342   :  { %p1071_p5 = scmp.ne.s32.totalorder %s1395_s13, %s1070_s20  ;;  %p1074_p6 = scmp.lt.u32.totalorder %s1070_s20, %s1395_s13 }
 0x344   :  { %p1076_p7 = pnand %p1074_p6, %p1071_p5 }
 0x346   :  { %1079 = shalt.err (!%p1076_p7)
}
 0x347   :  { %694 = dma.vmem_to_hbm [thread:$0]  %s692_s18, 128, %s1395_s13, [#allocation15]   ;;  %v519_v23 = vld [vmem:[#allocation11] sm:$0x3]  ;;  %v655_v33 = vld [vmem:[%s1392_s10] sm:$0xff] }
 0x348   :  { %v528_v24 = vrot.slane %v519_v23, %v259_v62  ;;  %v524_v32 = vrot.slane %v519_v23, %v255_v60  ;;  %s1129_s13 = smov [#allocation13]  }
 0x349   :  { %s671_s2 = sshll.u32 %s1129_s13, 4  ;;  %s672_s2 = int_to_ptr.vmem [resolvable:$true] %s671_s2 }
 0x34a   :  { %s1080_s24 = scalar_lea.vmem %s672_s2, 128  ;;  %p1085_p9 = scmp.lt.s32.totalorder %s672_s2, %s672_s2 }
 0x34b   :  { %p1081_p8 = scmp.ne.s32.totalorder %s672_s2, %s1080_s24  ;;  %p1086_p10 = scmp.lt.s32.totalorder %s1080_s24, %s1080_s24 }
 0x34d   :  { %p1087_p11 = por %p1086_p10, %p1085_p9 }
 0x34f   :  { %p1088_p12 = pnand %p1087_p11, %p1081_p8 }
 0x401   :  { %v645_v25 = vpop.f32.mrb[4].mxu1 }
 0x402   :  { %v647_v26 = vpop.f32.mrb[5].mxu1  ;;  %v646_v35 = vadd.f32 %v645_v25, %v524_v32 }
 0x403   :  { %v648_v27 = vadd.f32 %v647_v26, %v528_v24  ;;  %v649_v28 = vpop.f32.mrb[6].mxu1 }
 0x404   :  { %v650_v29 = vpop.f32.mrb[7].mxu1 }
 0x405   :  { %v652_v30 = vmul.f32 0.5, %v648_v27 }
 0x407   :  { %v653_v31 = vmul.f32 1.442695, %v652_v30 }
 0x409   :  { %900 = vpow2.f32 %v653_v31 }
 0x413   :  { %v901_v34 = vpop.eup %900 }
 0x414   :  { %v656_v36 = vmul.f32 %v901_v34, %v655_v33 }
 0x416   :  { %v657_v37 = vadd.f32 %v656_v36, %v646_v35 }
 0x418   :  { %v658_v38 = vmul.f32 0.5, %v657_v37 }
 0x41a   :  { %902 = vtanh.f32 %v658_v38 }
 0x424   :  { %v903_v39 = vpop.eup %902 }
 0x425   :  { %v660_v40 = vadd.f32 1.0, %v903_v39 }
 0x427   :  { %v661_v41 = vmul.f32 0.5, %v660_v40 }
 0x429   :  { %662 = vst [vmem:[#allocation13] sm:$0xff] %v661_v41 }
 0x42a   :  { %1091 = shalt.err (!%p1088_p12)
}
 0x42b   :  { %s1092_s30 = scalar_lea.hbm %s1393_s11, 128 }
 0x42c   :  { %p1093_p13 = scmp.ne.s32.totalorder %s1393_s11, %s1092_s30  ;;  %p1096_p0 = scmp.lt.u32.totalorder %s1092_s30, %s1393_s11 }
 0x42e   :  { %p1098_p1 = pnand %p1096_p0, %p1093_p13 }
 0x430   :  { %1101 = shalt.err (!%p1098_p1)
}
 0x431   :  { %674 = dma.vmem_to_hbm [thread:$0]  %s672_s2, 128, %s1393_s11, [#allocation4]  }
 0x432   :  { %1110 = dma.done.wait [#allocation4], 128  }
 0x433   :  { %1111 = vsyncadd [#allocation4], 4294967168 }
 0x434   :  { %1112 = dma.done.wait [#allocation15], 256  }
 0x435   :  { %1113 = vsyncadd [#allocation15], 4294967040 }
 0x436   :  { %704 = vsyncpa [#allocation3], 1 }
 0x437   :  { %705 = vsyncpa [#allocation6], 1 }
 0x438   :  { %706 = vsyncpa [#allocation9], 1 }
 0x439   :  { %707 = vsyncpa [#allocation12], 1 }
 0x43a   :  { %708 = vsyncpa [#allocation4], 1 }
 0x43b   :  { %709 = vsyncpa [#allocation15], 1 }

</bundles_post_ra>
